<compile_context>
chip_gen: v7x
topology: tpu7x:2x2x1
jax: 0.10.0
libtpu: 0.0.40
codegen_flags: <defaults>
</compile_context>

<pallas_src>
import jax
import jax.numpy as jnp
from jax.experimental import pallas as pl
from jax.experimental.pallas import tpu as pltpu


def _round_up(x, m):
    return (x + m - 1) // m * m


def _round_down(x, m):
    return x // m * m


def mf_kernel(ue_ref, ie_ref, b_ref, o_ref):
    # ue_ref / ie_ref: (TILE, D) in the tables' native dtype.
    # b_ref / o_ref:   (TILE, 1) f32 (combined user+item bias / output).
    ue = ue_ref[...].astype(jnp.float32)
    ie = ie_ref[...].astype(jnp.float32)
    dot = jnp.sum(ue * ie, axis=-1, keepdims=True)            # (TILE, 1)
    o_ref[...] = jax.nn.sigmoid(dot + b_ref[...])


def mf_forward(user_emb, item_emb, user_bias, item_bias, user_ids, item_ids,
               *, tb=8192):
    """Pallas-backed forward pass. Returns sigmoid scores of shape (B,)."""
    B = int(user_ids.shape[0])
    D = int(user_emb.shape[1])
    elt = jnp.dtype(user_emb.dtype).itemsize

    # ---- generation-aware tile / VMEM budgeting --------------------------------
    try:
        vmem_cap = int(pltpu.get_tpu_info().vmem_capacity_bytes)
    except Exception:
        vmem_cap = 64 * 1024 * 1024          # conservative floor (v7x physical)

    # Double-buffered per-batch-row footprint: 2 embedding streams + bias + out.
    bytes_per_row = 2 * (2 * D * elt + 4 + 4)
    budget = min(24 * 1024 * 1024, vmem_cap // 3)
    cap = max(128, _round_down(budget // bytes_per_row, 128))

    tile = max(128, min(_round_up(tb, 128), cap, _round_up(B, 128)))
    # Keep >= 2 grid steps when the batch allows it so the single "parallel"
    # axis can be sharded across both TensorCores on v7x.
    if B > 128:
        tile = min(tile, max(128, _round_up((B + 1) // 2, 128)))

    Bp = _round_up(B, tile)
    num_tiles = Bp // tile

    # Explicit scoped-VMEM limit: actual footprint + headroom, never above
    # physical capacity (covers large-D cases and v5e's 16 MiB scoped default).
    footprint = tile * bytes_per_row
    vmem_limit = int(min(vmem_cap,
                         max(32 * 1024 * 1024, footprint + 8 * 1024 * 1024)))

    # ---- XLA-side glue: pad ids, gather rows (native dtype, no transpose) ------
    uids = user_ids.astype(jnp.int32)
    iids = item_ids.astype(jnp.int32)
    pad = Bp - B
    if pad:
        # Row 0 is a valid (zero-initialized) padding row; the tail is sliced off.
        uids = jnp.pad(uids, (0, pad))
        iids = jnp.pad(iids, (0, pad))

    # TODO(synk): for tables that fit VMEM, fuse the gather fully in-kernel
    # (scalar-prefetched ids + VMEM-resident tables) to drop the gather's HBM
    # round-trip entirely; kept as XLA glue here (exposed via allow_input_fusion).
    ue = jnp.take(user_emb, uids, axis=0)                         # (Bp, D)
    ie = jnp.take(item_emb, iids, axis=0)                         # (Bp, D)
    bias = (jnp.take(user_bias[:, 0], uids, axis=0).astype(jnp.float32)
            + jnp.take(item_bias[:, 0], iids, axis=0).astype(jnp.float32))[:, None]  # (Bp, 1)

    out = pl.pallas_call(
        mf_kernel,
        out_shape=jax.ShapeDtypeStruct((Bp, 1), jnp.float32),
        grid_spec=pltpu.PrefetchScalarGridSpec(
            num_scalar_prefetch=0,
            grid=(num_tiles,),
            in_specs=[
                pl.BlockSpec((tile, D), lambda i: (i, 0)),
                pl.BlockSpec((tile, D), lambda i: (i, 0)),
                pl.BlockSpec((tile, 1), lambda i: (i, 0)),
            ],
            out_specs=pl.BlockSpec((tile, 1), lambda i: (i, 0)),
        ),
        compiler_params=pltpu.CompilerParams(
            dimension_semantics=("parallel",),
            allow_input_fusion=[True, True, True],
            vmem_limit_bytes=vmem_limit),
        cost_estimate=pl.CostEstimate(
            flops=2 * Bp * D + 2 * Bp,
            transcendentals=Bp,
            bytes_accessed=Bp * (2 * D * elt + 4 + 4)),
    )(ue, ie, bias)

    return out[:B, 0]   # matches torch .squeeze() on the (B, 1) bias path


def init_params(key, model_size, n_users, n_items):
    """Deterministic parameter init mirroring nn.Embedding (N(0,1), padding_idx=0)."""
    k1, k2, k3, k4 = jax.random.split(key, 4)
    user_emb = jax.random.normal(k1, (n_users + 1, model_size), jnp.float32).at[0].set(0.0)
    item_emb = jax.random.normal(k2, (n_items + 1, model_size), jnp.float32).at[0].set(0.0)
    user_bias = jax.random.normal(k3, (n_users + 1, 1), jnp.float32).at[0].set(0.0)
    item_bias = jax.random.normal(k4, (n_items + 1, 1), jnp.float32).at[0].set(0.0)
    return user_emb, item_emb, user_bias, item_bias


if __name__ == "__main__":
    model_size, n_users, n_items = 32, 64, 128
    B = 8

    key = jax.random.PRNGKey(0)
    kparam, kuid, kiid = jax.random.split(key, 3)
    user_emb, item_emb, user_bias, item_bias = init_params(
        kparam, model_size, n_users, n_items)

    user_ids = jax.random.randint(kuid, (B,), 0, n_users + 1, dtype=jnp.int32)
    item_ids = jax.random.randint(kiid, (B,), 0, n_items + 1, dtype=jnp.int32)

    out = mf_forward(user_emb, item_emb, user_bias, item_bias, user_ids, item_ids)
    out = jax.block_until_ready(out)

    # Pure-JAX reference check of the forward semantics.
    ref = jax.nn.sigmoid(
        jnp.sum(user_emb[user_ids] * item_emb[item_ids], axis=-1)
        + user_bias[user_ids][:, 0] + item_bias[item_ids][:, 0])
    assert out.shape == (B,)
    assert jnp.allclose(out, ref, atol=1e-6), "mismatch vs reference"

    print("KERNEL_OK")
</pallas_src>

<mosaic_0001>
module attributes {stable_mosaic.version = 11 : i64} {
  func.func @mf_kernel(%arg0: i32, %arg1: memref<128x32xf32, #tpu.memory_space<vmem>>, %arg2: memref<128x32xf32, #tpu.memory_space<vmem>>, %arg3: memref<128x1xf32, #tpu.memory_space<vmem>>, %arg4: memref<128x1xf32, #tpu.memory_space<vmem>>) attributes {dimension_semantics = [#tpu.dimension_semantics<parallel>], iteration_bounds = array<i64: 1>, scalar_prefetch = 0 : i64, scratch_operands = 0 : i64, tpu.core_type = #tpu.core_type<tc>, window_params = [{transform_indices = @transform_0, window_bounds = array<i64: 128, 32>}, {transform_indices = @transform_1, window_bounds = array<i64: 128, 32>}, {transform_indices = @transform_2, window_bounds = array<i64: 128, 1>}, {transform_indices = @transform_3, window_bounds = array<i64: 128, 1>}]} {
    %c0 = arith.constant 0 : index
    %c0_0 = arith.constant 0 : index
    %0 = vector.load %arg1[%c0, %c0_0] : memref<128x32xf32, #tpu.memory_space<vmem>>, vector<128x32xf32>
    %c0_1 = arith.constant 0 : index
    %c0_2 = arith.constant 0 : index
    %1 = vector.load %arg2[%c0_1, %c0_2] : memref<128x32xf32, #tpu.memory_space<vmem>>, vector<128x32xf32>
    %2 = arith.mulf %0, %1 : vector<128x32xf32>
    %cst = arith.constant dense<0.000000e+00> : vector<128xf32>
    %3 = vector.multi_reduction <add>, %2, %cst [1] : vector<128x32xf32> to vector<128xf32>
    %4 = vector.shape_cast %3 : vector<128xf32> to vector<128x1xf32>
    %c0_3 = arith.constant 0 : index
    %c0_4 = arith.constant 0 : index
    %5 = vector.load %arg3[%c0_3, %c0_4] : memref<128x1xf32, #tpu.memory_space<vmem>>, vector<128x1xf32>
    %6 = arith.addf %4, %5 : vector<128x1xf32>
    %7 = arith.negf %6 : vector<128x1xf32>
    %8 = math.exp %7 : vector<128x1xf32>
    %cst_5 = arith.constant 1.000000e+00 : f32
    %9 = vector.broadcast %cst_5 : f32 to vector<128x1xf32>
    %10 = arith.addf %9, %8 : vector<128x1xf32>
    %11 = arith.divf %9, %10 : vector<128x1xf32>
    %c0_6 = arith.constant 0 : index
    %c0_7 = arith.constant 0 : index
    %12 = vector.load %arg4[%c0_6, %c0_7] : memref<128x1xf32, #tpu.memory_space<vmem>>, vector<128x1xf32>
    tpu.vector_store %arg4[%c0_6, %c0_7], %11 {strides = array<i32>} : memref<128x1xf32, #tpu.memory_space<vmem>>, vector<128x1xf32>,
    return
  }
  func.func @transform_0(%arg0: i32) -> (i32, i32) {
    %c0_i32 = arith.constant 0 : i32
    %c0_i32_0 = arith.constant 0 : i32
    return %arg0, %c0_i32 : i32, i32
  }
  func.func @transform_1(%arg0: i32) -> (i32, i32) {
    %c0_i32 = arith.constant 0 : i32
    %c0_i32_0 = arith.constant 0 : i32
    return %arg0, %c0_i32 : i32, i32
  }
  func.func @transform_2(%arg0: i32) -> (i32, i32) {
    %c0_i32 = arith.constant 0 : i32
    %c0_i32_0 = arith.constant 0 : i32
    return %arg0, %c0_i32 : i32, i32
  }
  func.func @transform_3(%arg0: i32) -> (i32, i32) {
    %c0_i32 = arith.constant 0 : i32
    %c0_i32_0 = arith.constant 0 : i32
    return %arg0, %c0_i32 : i32, i32
  }
}

</mosaic_0001>

<bundles_post_ra>
// kernel: tpu_custom_call.1
= control target key start
LH: loop header
LB: loop body
LE: loop exit
PB: predicated region body
PF: predicated region fallthrough
CT: control target
= control target key end

     0   :  { %vm62_vm0 = vcmask 261120   ;;  %vm239_vm1 = vcmask 7168   ;;  %s584_s0 = inlined_call_operand.vmem [shape: f32[128,32], index: 0, kind: input, shape index: {}]   ;;  %s585_s1 = inlined_call_operand.vmem [shape: f32[128,32], index: 1, kind: input, shape index: {}]   ;;  %s586_s2 = inlined_call_operand.vmem [shape: f32[128,1], index: 2, kind: input, shape index: {}]   ;;  %s587_s3 = inlined_call_operand.vmem [shape: f32[128,1], index: 3, kind: output, shape index: {}]  }
   0x1   :  { %v16_v0 = vld [vmem:[%s584_s0 + $0x10] sm:$0xff]  ;;  %v14_v2 = vld [vmem:[%s584_s0] sm:$0xff]  ;;  %v17_v5 = vld [vmem:[%s584_s0 + $0x18] sm:$0xff] }
   0x2   :  { %v32_v1 = vld [vmem:[%s585_s1 + $0x10] sm:$0xff]  ;;  %v30_v4 = vld [vmem:[%s585_s1] sm:$0xff]  ;;  %v33_v6 = vld [vmem:[%s585_s1 + $0x18] sm:$0xff] }
   0x3   :  { %v48_v3 = vmul.f32 %v32_v1, %v16_v0  ;;  %v46_v7 = vmul.f32 %v30_v4, %v14_v2  ;;  %v49_v8 = vmul.f32 %v33_v6, %v17_v5  ;;  %v15_v9 = vld [vmem:[%s584_s0 + $0x8] sm:$0xff]  ;;  %v18_v15 = vld [vmem:[%s584_s0 + $0x20] sm:$0xff]  ;;  %v21_v22 = vld [vmem:[%s584_s0 + $0x38] sm:$0xff] }
   0x4   :  { %v31_v10 = vld [vmem:[%s585_s1 + $0x8] sm:$0xff]  ;;  %v34_v16 = vld [vmem:[%s585_s1 + $0x20] sm:$0xff]  ;;  %v37_v23 = vld [vmem:[%s585_s1 + $0x38] sm:$0xff] }
   0x5   :  { %v19_v11 = vld [vmem:[%s584_s0 + $0x28] sm:$0xff]  ;;  %v69_v12 = vsel %vm62_vm0, %v48_v3, 0.0  ;;  %v47_v13 = vmul.f32 %v31_v10, %v15_v9  ;;  %v63_v17 = vsel %vm62_vm0, %v46_v7, 0.0  ;;  %v72_v18 = vsel %vm62_vm0, %v49_v8, 0.0  ;;  %v20_v24 = vld [vmem:[%s584_s0 + $0x30] sm:$0xff]  ;;  %v22_v32 = vld [vmem:[%s584_s0 + $0x40] sm:$0xff] }
   0x6   :  { %v35_v14 = vld [vmem:[%s585_s1 + $0x28] sm:$0xff]  ;;  %70 = vadd.xlane.f32.xlu1 %v69_v12  ;;  %64 = vadd.xlane.f32.xlu0 %v63_v17  ;;  %v50_v21 = vmul.f32 %v34_v16, %v18_v15  ;;  %v36_v25 = vld [vmem:[%s585_s1 + $0x30] sm:$0xff]  ;;  %v53_v27 = vmul.f32 %v37_v23, %v21_v22  ;;  %v38_v33 = vld [vmem:[%s585_s1 + $0x40] sm:$0xff] }
   0x7   :  { %v51_v19 = vmul.f32 %v35_v14, %v19_v11  ;;  %v66_v20 = vsel %vm62_vm0, %v47_v13, 0.0  ;;  %v52_v29 = vmul.f32 %v36_v25, %v20_v24  ;;  %v23_v30 = vld [vmem:[%s584_s0 + $0x48] sm:$0xff]  ;;  %v54_v37 = vmul.f32 %v38_v33, %v22_v32  ;;  %v25_v38 = vld [vmem:[%s584_s0 + $0x58] sm:$0xff]  ;;  %v24_v40 = vld [vmem:[%s584_s0 + $0x50] sm:$0xff] }
   0x8   :  { %v75_v28 = vsel %vm62_vm0, %v50_v21, 0.0  ;;  %v39_v31 = vld [vmem:[%s585_s1 + $0x48] sm:$0xff]  ;;  %v84_v34 = vsel %vm62_vm0, %v53_v27, 0.0  ;;  %v41_v39 = vld [vmem:[%s585_s1 + $0x58] sm:$0xff]  ;;  %v40_v41 = vld [vmem:[%s585_s1 + $0x50] sm:$0xff] }
   0x9   :  { %v78_v26 = vsel %vm62_vm0, %v51_v19, 0.0  ;;  %v55_v35 = vmul.f32 %v39_v31, %v23_v30  ;;  %v81_v36 = vsel %vm62_vm0, %v52_v29, 0.0  ;;  %v57_v43 = vmul.f32 %v41_v39, %v25_v38  ;;  %v27_v46 = vld [vmem:[%s584_s0 + $0x68] sm:$0xff]  ;;  %v26_v48 = vld [vmem:[%s584_s0 + $0x60] sm:$0xff]  ;;  %v29_v54 = vld [vmem:[%s584_s0 + $0x78] sm:$0xff] }
   0xa   :  { %73 = vadd.xlane.f32.xlu1 %v72_v18  ;;  %67 = vadd.xlane.f32.xlu0 %v66_v20  ;;  %v87_v44 = vsel %vm62_vm0, %v54_v37, 0.0  ;;  %v56_v45 = vmul.f32 %v40_v41, %v24_v40  ;;  %v43_v47 = vld [vmem:[%s585_s1 + $0x68] sm:$0xff]  ;;  %v42_v49 = vld [vmem:[%s585_s1 + $0x60] sm:$0xff]  ;;  %v45_v55 = vld [vmem:[%s585_s1 + $0x78] sm:$0xff] }
   0xb   :  { %v90_v42 = vsel %vm62_vm0, %v55_v35, 0.0  ;;  %v96_v50 = vsel %vm62_vm0, %v57_v43, 0.0  ;;  %v59_v51 = vmul.f32 %v43_v47, %v27_v46  ;;  %v58_v53 = vmul.f32 %v42_v49, %v26_v48  ;;  %v28_v56 = vld [vmem:[%s584_s0 + $0x70] sm:$0xff]  ;;  %v111_v1 = vld [vmem:[%s586_s2] sm:$0xff]  ;;  %v114_v6 = vld [vmem:[%s586_s2 + $0x18] sm:$0xff] }
   0xc   :  { %v93_v52 = vsel %vm62_vm0, %v56_v45, 0.0  ;;  %v44_v57 = vld [vmem:[%s585_s1 + $0x70] sm:$0xff]  ;;  %v61_v59 = vmul.f32 %v45_v55, %v29_v54  ;;  %v112_v8 = vld [vmem:[%s586_s2 + $0x8] sm:$0xff]  ;;  %v115_v16 = vld [vmem:[%s586_s2 + $0x20] sm:$0xff] }
   0xd   :  { %v102_v58 = vsel %vm62_vm0, %v59_v51, 0.0  ;;  %v99_v60 = vsel %vm62_vm0, %v58_v53, 0.0  ;;  %v60_v61 = vmul.f32 %v44_v57, %v28_v56  ;;  %v113_v0 = vld [vmem:[%s586_s2 + $0x10] sm:$0xff]  ;;  %v116_v14 = vld [vmem:[%s586_s2 + $0x28] sm:$0xff]  ;;  %v118_v22 = vld [vmem:[%s586_s2 + $0x38] sm:$0xff] }
   0xe   :  { %79 = vadd.xlane.f32.xlu1 %v78_v26  ;;  %76 = vadd.xlane.f32.xlu0 %v75_v28  ;;  %v108_v62 = vsel %vm62_vm0, %v61_v59, 0.0  ;;  %v117_v24 = vld [vmem:[%s586_s2 + $0x30] sm:$0xff]  ;;  %v120_v30 = vld [vmem:[%s586_s2 + $0x48] sm:$0xff]  ;;  %v119_v33 = vld [vmem:[%s586_s2 + $0x40] sm:$0xff] }
   0xf   :  { %v105_v63 = vsel %vm62_vm0, %v60_v61, 0.0  ;;  %v121_v45 = vld [vmem:[%s586_s2 + $0x50] sm:$0xff]  ;;  %v124_v54 = vld [vmem:[%s586_s2 + $0x68] sm:$0xff]  ;;  %v123_v57 = vld [vmem:[%s586_s2 + $0x60] sm:$0xff] }
  0x12   :  { %85 = vadd.xlane.f32.xlu1 %v84_v34  ;;  %82 = vadd.xlane.f32.xlu0 %v81_v36 }
  0x16   :  { %91 = vadd.xlane.f32.xlu1 %v90_v42  ;;  %88 = vadd.xlane.f32.xlu0 %v87_v44  ;;  %v122_v42 = vld [vmem:[%s586_s2 + $0x58] sm:$0xff] }
  0x1a   :  { %97 = vadd.xlane.f32.xlu1 %v96_v50  ;;  %94 = vadd.xlane.f32.xlu0 %v93_v52 }
  0x1e   :  { %103 = vadd.xlane.f32.xlu1 %v102_v58  ;;  %100 = vadd.xlane.f32.xlu0 %v99_v60 }
  0x22   :  { %109 = vadd.xlane.f32.xlu1 %v108_v62  ;;  %106 = vadd.xlane.f32.xlu0 %v105_v63 }
  0x93   :  { %v71_v2 = vpop.xlane.xlu1 %70  ;;  %v65_v4 = vpop.xlane.xlu0 %64 }
  0x94   :  { %v129_v3 = vadd.f32 %v113_v0, %v71_v2  ;;  %v127_v5 = vadd.f32 %v111_v1, %v65_v4  ;;  %v126_v2 = vld [vmem:[%s586_s2 + $0x78] sm:$0xff] }
  0x96   :  { %v262_v7 = vmul.f32 -1.442695, %v129_v3  ;;  %v260_v9 = vmul.f32 -1.442695, %v127_v5  ;;  %v125_v5 = vld [vmem:[%s586_s2 + $0x70] sm:$0xff] }
  0x97   :  { %v74_v10 = vpop.xlane.xlu1 %73  ;;  %v68_v12 = vpop.xlane.xlu0 %67 }
  0x98   :  { %276 = vpow2.f32 %v262_v7  ;;  %v130_v11 = vadd.f32 %v114_v6, %v74_v10  ;;  %v128_v13 = vadd.f32 %v112_v8, %v68_v12 }
  0x99   :  { %278 = vpow2.f32 %v260_v9 }
  0x9a   :  { %v263_v15 = vmul.f32 -1.442695, %v130_v11  ;;  %v261_v17 = vmul.f32 -1.442695, %v128_v13 }
  0x9b   :  { %v80_v18 = vpop.xlane.xlu1 %79  ;;  %v77_v20 = vpop.xlane.xlu0 %76 }
  0x9c   :  { %280 = vpow2.f32 %v263_v15  ;;  %v132_v19 = vadd.f32 %v116_v14, %v80_v18  ;;  %v131_v21 = vadd.f32 %v115_v16, %v77_v20 }
  0x9d   :  { %282 = vpow2.f32 %v261_v17 }
  0x9e   :  { %v265_v23 = vmul.f32 -1.442695, %v132_v19  ;;  %v264_v25 = vmul.f32 -1.442695, %v131_v21 }
  0x9f   :  { %v86_v26 = vpop.xlane.xlu1 %85  ;;  %v83_v28 = vpop.xlane.xlu0 %82 }
  0xa0   :  { %284 = vpow2.f32 %v265_v23  ;;  %v134_v27 = vadd.f32 %v118_v22, %v86_v26  ;;  %v133_v29 = vadd.f32 %v117_v24, %v83_v28 }
  0xa1   :  { %286 = vpow2.f32 %v264_v25 }
  0xa2   :  { %v277_v31 = vpop.eup %276  ;;  %v267_v32 = vmul.f32 -1.442695, %v134_v27  ;;  %v266_v36 = vmul.f32 -1.442695, %v133_v29 }
  0xa3   :  { %v279_v34 = vpop.eup %278  ;;  %v193_v35 = vadd.f32 1.0, %v277_v31  ;;  %v92_v37 = vpop.xlane.xlu1 %91 }
  0xa4   :  { %v191_v38 = vadd.f32 1.0, %v279_v34  ;;  %288 = vpow2.f32 %v267_v32  ;;  %v136_v39 = vadd.f32 %v120_v30, %v92_v37  ;;  %v89_v40 = vpop.xlane.xlu0 %88 }
  0xa5   :  { %290 = vrcp.f32 %v193_v35  ;;  %v135_v41 = vadd.f32 %v119_v33, %v89_v40 }
  0xa6   :  { %v281_v43 = vpop.eup %280  ;;  %292 = vrcp.f32 %v191_v38  ;;  %v269_v44 = vmul.f32 -1.442695, %v136_v39 }
  0xa7   :  { %v283_v46 = vpop.eup %282  ;;  %v194_v47 = vadd.f32 1.0, %v281_v43  ;;  %294 = vpow2.f32 %v266_v36  ;;  %v268_v48 = vmul.f32 -1.442695, %v135_v41  ;;  %v98_v49 = vpop.xlane.xlu1 %97 }
  0xa8   :  { %v192_v50 = vadd.f32 1.0, %v283_v46  ;;  %296 = vpow2.f32 %v269_v44  ;;  %v138_v51 = vadd.f32 %v122_v42, %v98_v49  ;;  %v95_v52 = vpop.xlane.xlu0 %94 }
  0xa9   :  { %298 = vrcp.f32 %v194_v47  ;;  %v137_v53 = vadd.f32 %v121_v45, %v95_v52 }
  0xaa   :  { %v285_v55 = vpop.eup %284  ;;  %300 = vrcp.f32 %v192_v50  ;;  %v271_v56 = vmul.f32 -1.442695, %v138_v51 }
  0xab   :  { %v287_v58 = vpop.eup %286  ;;  %v196_v59 = vadd.f32 1.0, %v285_v55  ;;  %302 = vpow2.f32 %v268_v48  ;;  %v270_v60 = vmul.f32 -1.442695, %v137_v53  ;;  %v104_v61 = vpop.xlane.xlu1 %103 }
  0xac   :  { %v195_v62 = vadd.f32 1.0, %v287_v58  ;;  %304 = vpow2.f32 %v271_v56  ;;  %v140_v63 = vadd.f32 %v124_v54, %v104_v61  ;;  %v101_v0 = vpop.xlane.xlu0 %100 }
  0xad   :  { %306 = vrcp.f32 %v196_v59  ;;  %v139_v1 = vadd.f32 %v123_v57, %v101_v0 }
  0xae   :  { %v289_v3 = vpop.eup %288  ;;  %308 = vrcp.f32 %v195_v62  ;;  %v273_v4 = vmul.f32 -1.442695, %v140_v63 }
  0xaf   :  { %v291_v6 = vpop.eup %290  ;;  %v198_v7 = vadd.f32 1.0, %v289_v3  ;;  %310 = vpow2.f32 %v270_v60  ;;  %v272_v8 = vmul.f32 -1.442695, %v139_v1  ;;  %v110_v9 = vpop.xlane.xlu1 %109 }
  0xb0   :  { %v293_v10 = vpop.eup %292  ;;  %242 = vst.msk [vmem:[%s587_s3 + $0x10] sm:$0xff] %vm239_vm1, %v291_v6  ;;  %312 = vpow2.f32 %v273_v4  ;;  %v142_v11 = vadd.f32 %v126_v2, %v110_v9  ;;  %v107_v12 = vpop.xlane.xlu0 %106 }
  0xb1   :  { %v295_v13 = vpop.eup %294  ;;  %240 = vst.msk [vmem:[%s587_s3] sm:$0xff] %vm239_vm1, %v293_v10  ;;  %314 = vrcp.f32 %v198_v7  ;;  %v141_v14 = vadd.f32 %v125_v5, %v107_v12 }
  0xb2   :  { %v297_v15 = vpop.eup %296  ;;  %v197_v16 = vadd.f32 1.0, %v295_v13  ;;  %316 = vpow2.f32 %v272_v8  ;;  %v275_v17 = vmul.f32 -1.442695, %v142_v11 }
  0xb3   :  { %v299_v18 = vpop.eup %298  ;;  %v200_v19 = vadd.f32 1.0, %v297_v15  ;;  %v274_v20 = vmul.f32 -1.442695, %v141_v14 }
  0xb4   :  { %v301_v21 = vpop.eup %300  ;;  %243 = vst.msk [vmem:[%s587_s3 + $0x18] sm:$0xff] %vm239_vm1, %v299_v18  ;;  %318 = vrcp.f32 %v197_v16 }
  0xb5   :  { %v303_v22 = vpop.eup %302  ;;  %241 = vst.msk [vmem:[%s587_s3 + $0x8] sm:$0xff] %vm239_vm1, %v301_v21  ;;  %320 = vrcp.f32 %v200_v19 }
  0xb6   :  { %v305_v23 = vpop.eup %304  ;;  %v199_v24 = vadd.f32 1.0, %v303_v22  ;;  %322 = vpow2.f32 %v275_v17 }
  0xb7   :  { %v307_v25 = vpop.eup %306  ;;  %v202_v26 = vadd.f32 1.0, %v305_v23  ;;  %324 = vpow2.f32 %v274_v20 }
  0xb8   :  { %v309_v27 = vpop.eup %308  ;;  %245 = vst.msk [vmem:[%s587_s3 + $0x28] sm:$0xff] %vm239_vm1, %v307_v25  ;;  %326 = vrcp.f32 %v199_v24 }
  0xb9   :  { %v311_v28 = vpop.eup %310  ;;  %244 = vst.msk [vmem:[%s587_s3 + $0x20] sm:$0xff] %vm239_vm1, %v309_v27  ;;  %328 = vrcp.f32 %v202_v26 }
  0xba   :  { %v313_v29 = vpop.eup %312  ;;  %v201_v30 = vadd.f32 1.0, %v311_v28 }
  0xbb   :  { %v315_v31 = vpop.eup %314  ;;  %v204_v32 = vadd.f32 1.0, %v313_v29 }
  0xbc   :  { %v317_v33 = vpop.eup %316  ;;  %247 = vst.msk [vmem:[%s587_s3 + $0x38] sm:$0xff] %vm239_vm1, %v315_v31  ;;  %330 = vrcp.f32 %v201_v30 }
  0xbd   :  { %332 = vrcp.f32 %v204_v32  ;;  %v203_v34 = vadd.f32 1.0, %v317_v33 }
  0xbe   :  { %v319_v35 = vpop.eup %318 }
  0xbf   :  { %v321_v36 = vpop.eup %320  ;;  %246 = vst.msk [vmem:[%s587_s3 + $0x30] sm:$0xff] %vm239_vm1, %v319_v35  ;;  %334 = vrcp.f32 %v203_v34 }
  0xc0   :  { %v323_v37 = vpop.eup %322  ;;  %249 = vst.msk [vmem:[%s587_s3 + $0x48] sm:$0xff] %vm239_vm1, %v321_v36 }
  0xc1   :  { %v325_v38 = vpop.eup %324  ;;  %v206_v39 = vadd.f32 1.0, %v323_v37 }
  0xc2   :  { %v327_v40 = vpop.eup %326  ;;  %v205_v41 = vadd.f32 1.0, %v325_v38 }
  0xc3   :  { %v329_v42 = vpop.eup %328  ;;  %248 = vst.msk [vmem:[%s587_s3 + $0x40] sm:$0xff] %vm239_vm1, %v327_v40  ;;  %336 = vrcp.f32 %v206_v39 }
  0xc4   :  { %251 = vst.msk [vmem:[%s587_s3 + $0x58] sm:$0xff] %vm239_vm1, %v329_v42  ;;  %338 = vrcp.f32 %v205_v41 }
  0xc6   :  { %v331_v43 = vpop.eup %330 }
  0xc7   :  { %v333_v44 = vpop.eup %332  ;;  %250 = vst.msk [vmem:[%s587_s3 + $0x50] sm:$0xff] %vm239_vm1, %v331_v43 }
  0xc8   :  { %253 = vst.msk [vmem:[%s587_s3 + $0x68] sm:$0xff] %vm239_vm1, %v333_v44 }
  0xc9   :  { %v335_v45 = vpop.eup %334 }
  0xca   :  { %252 = vst.msk [vmem:[%s587_s3 + $0x60] sm:$0xff] %vm239_vm1, %v335_v45 }
  0xcd   :  { %v337_v46 = vpop.eup %336 }
  0xce   :  { %v339_v47 = vpop.eup %338  ;;  %255 = vst.msk [vmem:[%s587_s3 + $0x78] sm:$0xff] %vm239_vm1, %v337_v46 }
  0xcf   :  { %254 = vst.msk [vmem:[%s587_s3 + $0x70] sm:$0xff] %vm239_vm1, %v339_v47 }

</bundles_post_ra>
